<compile_context>
chip_gen: v6e
topology: v6e:2x2x1
jax: 0.10.0
libtpu: 0.0.40
codegen_flags: <defaults>
</compile_context>

<pallas_src>
import jax
import jax.numpy as jnp
import numpy as np
from jax.experimental import pallas as pl
from jax.experimental.pallas import tpu as pltpu

EPS = 1e-09


def _encoder_head_kernel(feat_ref, w_ref, b_ref, mu_ref, std_ref):
    # fc = Dropout(identity in eval) -> Linear -> Tanh, all in one grid step.
    acc = jnp.dot(feat_ref[...], w_ref[...],
                  preferred_element_type=jnp.float32)          # (B, D_out) f32
    stats = jnp.tanh(acc + b_ref[...])                         # (B, D_out) f32
    mu_ref[...] = stats
    # Full-slab std: sqrt(exp(.)+EPS) over all lanes; mu lanes are discarded
    # by the wrapper. Keeps both outputs lane-dense (single vreg each).
    std_ref[...] = jnp.sqrt(jnp.exp(stats) + EPS)


def encoder_a_head(feature, w, b, *, z_private, z_shared,
                   param_dtype=jnp.float32):
    """feature: (B, K) f32; w: (K, D_out) f32; b: (D_out,) f32.

    Returns (muPrivate, stdPrivate, muShared, stdShared), each (1, B, dim),
    matching PyTorch's `stats.unsqueeze(0)` slicing semantics.

    param_dtype: dtype used to stream feature/weights into the kernel
                 (jnp.bfloat16 halves the dominant weight-DMA cost; the MXU
                 still accumulates in f32 and all post-matmul math is f32).
    """
    B, K = feature.shape
    d_out = 2 * z_private + 2 * z_shared
    assert w.shape == (K, d_out) and b.shape == (d_out,)

    feat_in = feature.astype(param_dtype)
    w_in = w.astype(param_dtype)
    b2 = b.reshape(1, d_out).astype(jnp.float32)   # bias added post-accumulation in f32

    out_shapes = (
        jax.ShapeDtypeStruct((B, d_out), jnp.float32),   # mu slab  (== stats)
        jax.ShapeDtypeStruct((B, d_out), jnp.float32),   # std slab (== sqrt(exp(stats)+EPS))
    )

    itemsize = jnp.dtype(param_dtype).itemsize
    cost = pl.CostEstimate(
        flops=2 * B * K * d_out,
        transcendentals=3 * B * d_out,                   # tanh + exp + sqrt per element
        bytes_accessed=(B * K + K * d_out) * itemsize
                        + d_out * 4 + 2 * B * d_out * 4,
    )

    grid_spec = pltpu.PrefetchScalarGridSpec(
        num_scalar_prefetch=0,
        grid=(1,),                                       # single step: everything fits VMEM
        in_specs=[
            pl.BlockSpec((B, K), lambda i: (0, 0)),      # full feature block
            pl.BlockSpec((K, d_out), lambda i: (0, 0)),  # full weight block
            pl.BlockSpec((1, d_out), lambda i: (0, 0)),  # bias
        ],
        out_specs=[
            pl.BlockSpec((B, d_out), lambda i: (0, 0)),  # mu slab (lane-dense)
            pl.BlockSpec((B, d_out), lambda i: (0, 0)),  # std slab (lane-dense)
        ],
    )

    mu_full, std_full = pl.pallas_call(
        _encoder_head_kernel,
        out_shape=out_shapes,
        grid_spec=grid_spec,
        compiler_params=pltpu.CompilerParams(
            dimension_semantics=("arbitrary",)),
        cost_estimate=cost,
    )(feat_in, w_in, b2)

    # 16/16/8/8 column split done in the wrapper (layout plumbing, not compute).
    zp, zs = z_private, z_shared
    mu_p = mu_full[:, :zp]
    std_p = std_full[:, zp:2 * zp]
    mu_s = mu_full[:, 2 * zp:2 * zp + zs]
    std_s = std_full[:, 2 * zp + zs:]

    # stats.unsqueeze(0) -> leading singleton "num_samples" axis.
    return (mu_p[None], std_p[None], mu_s[None], std_s[None])


def _reference(feature, w, b, z_private, z_shared):
    stats = jnp.tanh(feature @ w + b)[None]  # (1, B, D_out)
    zp, zs = z_private, z_shared
    mu_p = stats[:, :, :zp]
    std_p = jnp.sqrt(jnp.exp(stats[:, :, zp:2 * zp]) + EPS)
    mu_s = stats[:, :, 2 * zp:2 * zp + zs]
    std_s = jnp.sqrt(jnp.exp(stats[:, :, 2 * zp + zs:]) + EPS)
    return mu_p, std_p, mu_s, std_s


if __name__ == "__main__":
    key = jax.random.PRNGKey(0)
    k_x, k_feat, k_w = jax.random.split(key, 3)

    B = 2
    Z_PRIVATE = 16
    Z_SHARED = 8
    K_FEAT = 2048                      # resnet50 feature dim (Linear in_features)
    D_OUT = 2 * Z_PRIVATE + 2 * Z_SHARED

    # Image input (what EncoderA.forward receives) — backbone not run, see TODO above.
    x = jax.random.normal(k_x, (B, 3, 32, 32), dtype=jnp.float32)  # NCHW
    # Stand-in for resnet(x).view(B, -1): deterministic synthetic feature.
    feature = jax.random.normal(k_feat, (B, K_FEAT), dtype=jnp.float32)

    # Deterministic kaiming-normal init of the fc Linear (fan_in = 2048), bias = 0.
    w = jax.random.normal(k_w, (K_FEAT, D_OUT), dtype=jnp.float32) * jnp.sqrt(2.0 / K_FEAT)
    b = jnp.zeros((D_OUT,), dtype=jnp.float32)

    refs = _reference(feature, w, b, Z_PRIVATE, Z_SHARED)

    # 1) Exact-f32 path: bit-for-bit module semantics, tight tolerance.
    outs_f32 = encoder_a_head(feature, w, b,
                              z_private=Z_PRIVATE, z_shared=Z_SHARED,
                              param_dtype=jnp.float32)
    outs_f32 = jax.block_until_ready(outs_f32)
    for got, want in zip(outs_f32, refs):
        np.testing.assert_allclose(np.asarray(got), np.asarray(want),
                                   rtol=1e-5, atol=1e-5)

    # 2) bf16 weight-streaming path (halves weight DMA); f32 MXU accumulation,
    #    so only the bf16 input quantization shows up in the tolerance.
    outs_bf16 = encoder_a_head(feature, w, b,
                               z_private=Z_PRIVATE, z_shared=Z_SHARED,
                               param_dtype=jnp.bfloat16)
    outs_bf16 = jax.block_until_ready(outs_bf16)
    for got, want in zip(outs_bf16, refs):
        np.testing.assert_allclose(np.asarray(got), np.asarray(want),
                                   rtol=2e-2, atol=2e-2)

    print("KERNEL_OK")
</pallas_src>

<mosaic_0001>
module attributes {stable_mosaic.version = 11 : i64} {
  func.func @_encoder_head_kernel(%arg0: i32, %arg1: memref<2x2048xf32, #tpu.memory_space<vmem>>, %arg2: memref<2048x48xf32, #tpu.memory_space<vmem>>, %arg3: memref<1x48xf32, #tpu.memory_space<vmem>>, %arg4: memref<2x48xf32, #tpu.memory_space<vmem>>, %arg5: memref<2x48xf32, #tpu.memory_space<vmem>>) attributes {dimension_semantics = [#tpu.dimension_semantics<arbitrary>], iteration_bounds = array<i64: 1>, scalar_prefetch = 0 : i64, scratch_operands = 0 : i64, tpu.core_type = #tpu.core_type<tc>, window_params = [{pipeline_mode = #tpu.pipeline_mode<synchronous>, transform_indices = @transform_0, window_bounds = array<i64: 2, 2048>}, {pipeline_mode = #tpu.pipeline_mode<synchronous>, transform_indices = @transform_1, window_bounds = array<i64: 2048, 48>}, {pipeline_mode = #tpu.pipeline_mode<synchronous>, transform_indices = @transform_2, window_bounds = array<i64: 1, 48>}, {pipeline_mode = #tpu.pipeline_mode<synchronous>, transform_indices = @transform_3, window_bounds = array<i64: 2, 48>}, {pipeline_mode = #tpu.pipeline_mode<synchronous>, transform_indices = @transform_4, window_bounds = array<i64: 2, 48>}]} {
    %c0 = arith.constant 0 : index
    %c0_0 = arith.constant 0 : index
    %0 = vector.load %arg1[%c0, %c0_0] : memref<2x2048xf32, #tpu.memory_space<vmem>>, vector<2x2048xf32>
    %c0_1 = arith.constant 0 : index
    %c0_2 = arith.constant 0 : index
    %1 = vector.load %arg2[%c0_1, %c0_2] : memref<2048x48xf32, #tpu.memory_space<vmem>>, vector<2048x48xf32>
    %cst = arith.constant dense<0.000000e+00> : vector<2x48xf32>
    %2 = tpu.matmul %0, %1, %cst {dimension_numbers = #tpu.dot_dimension_numbers<[1], [0], [0], [1], [0, 0, 1, 1], [], []>} : vector<2x2048xf32>, vector<2048x48xf32>, vector<2x48xf32> -> vector<2x48xf32>
    %c0_3 = arith.constant 0 : index
    %c0_4 = arith.constant 0 : index
    %3 = vector.load %arg3[%c0_3, %c0_4] : memref<1x48xf32, #tpu.memory_space<vmem>>, vector<1x48xf32>
    %4 = vector.broadcast %3 : vector<1x48xf32> to vector<2x48xf32>
    %5 = arith.addf %2, %4 : vector<2x48xf32>
    %6 = math.tanh %5 : vector<2x48xf32>
    %c0_5 = arith.constant 0 : index
    %c0_6 = arith.constant 0 : index
    %7 = vector.load %arg4[%c0_5, %c0_6] : memref<2x48xf32, #tpu.memory_space<vmem>>, vector<2x48xf32>
    tpu.vector_store %arg4[%c0_5, %c0_6], %6 {strides = array<i32>} : memref<2x48xf32, #tpu.memory_space<vmem>>, vector<2x48xf32>,
    %8 = math.exp %6 : vector<2x48xf32>
    %cst_7 = arith.constant 9.99999971E-10 : f32
    %9 = vector.broadcast %cst_7 : f32 to vector<2x48xf32>
    %10 = arith.addf %8, %9 : vector<2x48xf32>
    %11 = math.sqrt %10 : vector<2x48xf32>
    %c0_8 = arith.constant 0 : index
    %c0_9 = arith.constant 0 : index
    %12 = vector.load %arg5[%c0_8, %c0_9] : memref<2x48xf32, #tpu.memory_space<vmem>>, vector<2x48xf32>
    tpu.vector_store %arg5[%c0_8, %c0_9], %11 {strides = array<i32>} : memref<2x48xf32, #tpu.memory_space<vmem>>, vector<2x48xf32>,
    return
  }
  func.func @transform_0(%arg0: i32) -> (i32, i32) {
    %c0_i32 = arith.constant 0 : i32
    %c0_i32_0 = arith.constant 0 : i32
    %c0_i32_1 = arith.constant 0 : i32
    return %c0_i32, %c0_i32_0 : i32, i32
  }
  func.func @transform_1(%arg0: i32) -> (i32, i32) {
    %c0_i32 = arith.constant 0 : i32
    %c0_i32_0 = arith.constant 0 : i32
    %c0_i32_1 = arith.constant 0 : i32
    return %c0_i32, %c0_i32_0 : i32, i32
  }
  func.func @transform_2(%arg0: i32) -> (i32, i32) {
    %c0_i32 = arith.constant 0 : i32
    %c0_i32_0 = arith.constant 0 : i32
    %c0_i32_1 = arith.constant 0 : i32
    return %c0_i32, %c0_i32_0 : i32, i32
  }
  func.func @transform_3(%arg0: i32) -> (i32, i32) {
    %c0_i32 = arith.constant 0 : i32
    %c0_i32_0 = arith.constant 0 : i32
    %c0_i32_1 = arith.constant 0 : i32
    return %c0_i32, %c0_i32_0 : i32, i32
  }
  func.func @transform_4(%arg0: i32) -> (i32, i32) {
    %c0_i32 = arith.constant 0 : i32
    %c0_i32_0 = arith.constant 0 : i32
    %c0_i32_1 = arith.constant 0 : i32
    return %c0_i32, %c0_i32_0 : i32, i32
  }
}

</mosaic_0001>

<bundles_post_ra>
// kernel: tpu_custom_call.1
= control target key start
LH: loop header
LB: loop body
LE: loop exit
PB: predicated region body
PF: predicated region fallthrough
CT: control target
= control target key end

     0   :  { %10 = vsyncpa [#allocation3], 0  ;;  %v1313_v30 = vmov 1983009808   ;;  %v293_v32 = vlaneseq  ;;  %s2142_s0 = inlined_call_operand.vmem [shape: f32[2,2048], index: 0, kind: input, shape index: {}]   ;;  %s2143_s1 = inlined_call_operand.vmem [shape: f32[2048,48], index: 1, kind: input, shape index: {}]   ;;  %s2144_s2 = inlined_call_operand.vmem [shape: f32[1,48], index: 2, kind: input, shape index: {}]   ;;  %s2145_s3 = inlined_call_operand.hbm [shape: f32[2,48], index: 3, kind: output, shape index: {0}]   ;;  %s2146_s4 = inlined_call_operand.hbm [shape: f32[2,48], index: 4, kind: output, shape index: {1}]  }
   0x1   :  { %v53_v0 = vld [vmem:[%s2143_s1 + $0xf8] sm:$0xff]  ;;  %v52_v4 = vld [vmem:[%s2143_s1 + $0xf0] sm:$0xff]  ;;  %v51_v8 = vld [vmem:[%s2143_s1 + $0xe8] sm:$0xff]  ;;  %v291_v31 = vunpack.c.l.s4 %v1313_v30 }
   0x2   :  { %v85_v1 = vld [vmem:[%s2143_s1 + $0x1f8] sm:$0xff]  ;;  %976 = vmatprep.subr.mxu0 %v53_v0  ;;  %v84_v5 = vld [vmem:[%s2143_s1 + $0x1f0] sm:$0xff]  ;;  %v83_v9 = vld [vmem:[%s2143_s1 + $0x1e8] sm:$0xff]  ;;  %v294_v42 = vshrl.u32 %v293_v32, 7 }
   0x3   :  { %v37_v2 = vld [vmem:[%s2143_s1 + $0x78] sm:$0xff]  ;;  %1011 = vmatprep.subr.mxu1 %v85_v1  ;;  %v36_v6 = vld [vmem:[%s2143_s1 + $0x70] sm:$0xff]  ;;  %v35_v10 = vld [vmem:[%s2143_s1 + $0x68] sm:$0xff]  ;;  %v292_v41 = vunpack.c.0.s8 %v291_v31 }
   0x4   :  { %v69_v3 = vld [vmem:[%s2143_s1 + $0x178] sm:$0xff]  ;;  %977 = vmatpush3.msra.mxu0 %v37_v2  ;;  %v68_v7 = vld [vmem:[%s2143_s1 + $0x170] sm:$0xff]  ;;  %v67_v11 = vld [vmem:[%s2143_s1 + $0x168] sm:$0xff] }
   0x5   :  { %1012 = vmatpush3.msra.mxu1 %v69_v3  ;;  %978 = vmatprep.subr.mxu0 %v52_v4  ;;  %v50_v12 = vld [vmem:[%s2143_s1 + $0xe0] sm:$0xff]  ;;  %v49_v16 = vld [vmem:[%s2143_s1 + $0xd8] sm:$0xff]  ;;  %v48_v20 = vld [vmem:[%s2143_s1 + $0xd0] sm:$0xff]  ;;  %v1479_v51 = vsub.s32 %v292_v41, %v294_v42 }
   0x6   :  { %1013 = vmatprep.subr.mxu1 %v84_v5  ;;  %979 = vmatpush3.msra.mxu0 %v36_v6  ;;  %v82_v13 = vld [vmem:[%s2143_s1 + $0x1e0] sm:$0xff]  ;;  %v81_v17 = vld [vmem:[%s2143_s1 + $0x1d8] sm:$0xff]  ;;  %v80_v21 = vld [vmem:[%s2143_s1 + $0x1d0] sm:$0xff] }
   0x7   :  { %1014 = vmatpush3.msra.mxu1 %v68_v7  ;;  %980 = vmatprep.subr.mxu0 %v51_v8  ;;  %v34_v14 = vld [vmem:[%s2143_s1 + $0x60] sm:$0xff]  ;;  %v33_v18 = vld [vmem:[%s2143_s1 + $0x58] sm:$0xff]  ;;  %v32_v22 = vld [vmem:[%s2143_s1 + $0x50] sm:$0xff] }
   0x8   :  { %1015 = vmatprep.subr.mxu1 %v83_v9  ;;  %v66_v15 = vld [vmem:[%s2143_s1 + $0x160] sm:$0xff]  ;;  %981 = vmatpush3.msra.mxu0 %v35_v10  ;;  %v65_v19 = vld [vmem:[%s2143_s1 + $0x158] sm:$0xff]  ;;  %v64_v23 = vld [vmem:[%s2143_s1 + $0x150] sm:$0xff] }
   0x9   :  { %1016 = vmatpush3.msra.mxu1 %v67_v11  ;;  %982 = vmatprep.subr.mxu0 %v50_v12  ;;  %v47_v24 = vld [vmem:[%s2143_s1 + $0xc8] sm:$0xff]  ;;  %v46_v28 = vld [vmem:[%s2143_s1 + $0xc0] sm:$0xff]  ;;  %v45_v35 = vld [vmem:[%s2143_s1 + $0xb8] sm:$0xff] }
   0xa   :  { %1017 = vmatprep.subr.mxu1 %v82_v13  ;;  %983 = vmatpush3.msra.mxu0 %v34_v14  ;;  %v79_v25 = vld [vmem:[%s2143_s1 + $0x1c8] sm:$0xff]  ;;  %v78_v29 = vld [vmem:[%s2143_s1 + $0x1c0] sm:$0xff]  ;;  %v77_v36 = vld [vmem:[%s2143_s1 + $0x1b8] sm:$0xff] }
   0xb   :  { %1018 = vmatpush3.msra.mxu1 %v66_v15  ;;  %984 = vmatprep.subr.mxu0 %v49_v16  ;;  %v31_v26 = vld [vmem:[%s2143_s1 + $0x48] sm:$0xff]  ;;  %v30_v33 = vld [vmem:[%s2143_s1 + $0x40] sm:$0xff]  ;;  %v29_v37 = vld [vmem:[%s2143_s1 + $0x38] sm:$0xff] }
   0xc   :  { %1019 = vmatprep.subr.mxu1 %v81_v17  ;;  %985 = vmatpush3.msra.mxu0 %v33_v18  ;;  %v63_v27 = vld [vmem:[%s2143_s1 + $0x148] sm:$0xff]  ;;  %v62_v34 = vld [vmem:[%s2143_s1 + $0x140] sm:$0xff]  ;;  %v61_v38 = vld [vmem:[%s2143_s1 + $0x138] sm:$0xff] }
   0xd   :  { %1020 = vmatpush3.msra.mxu1 %v65_v19  ;;  %986 = vmatprep.subr.mxu0 %v48_v20  ;;  %v44_v39 = vld [vmem:[%s2143_s1 + $0xb0] sm:$0xff]  ;;  %v43_v45 = vld [vmem:[%s2143_s1 + $0xa8] sm:$0xff]  ;;  %v42_v49 = vld [vmem:[%s2143_s1 + $0xa0] sm:$0xff] }
   0xe   :  { %1021 = vmatprep.subr.mxu1 %v80_v21  ;;  %987 = vmatpush3.msra.mxu0 %v32_v22  ;;  %v76_v40 = vld [vmem:[%s2143_s1 + $0x1b0] sm:$0xff]  ;;  %v75_v46 = vld [vmem:[%s2143_s1 + $0x1a8] sm:$0xff]  ;;  %v74_v50 = vld [vmem:[%s2143_s1 + $0x1a0] sm:$0xff] }
   0xf   :  { %1022 = vmatpush3.msra.mxu1 %v64_v23  ;;  %988 = vmatprep.subr.mxu0 %v47_v24  ;;  %v28_v43 = vld [vmem:[%s2143_s1 + $0x30] sm:$0xff]  ;;  %v27_v47 = vld [vmem:[%s2143_s1 + $0x28] sm:$0xff]  ;;  %v26_v52 = vld [vmem:[%s2143_s1 + $0x20] sm:$0xff] }
  0x10   :  { %1023 = vmatprep.subr.mxu1 %v79_v25  ;;  %989 = vmatpush3.msra.mxu0 %v31_v26  ;;  %v60_v44 = vld [vmem:[%s2143_s1 + $0x130] sm:$0xff]  ;;  %v59_v48 = vld [vmem:[%s2143_s1 + $0x128] sm:$0xff]  ;;  %v58_v53 = vld [vmem:[%s2143_s1 + $0x120] sm:$0xff] }
  0x11   :  { %1024 = vmatpush3.msra.mxu1 %v63_v27  ;;  %990 = vmatprep.subr.mxu0 %v46_v28  ;;  %v18_v54 = vld [vmem:[%s2142_s0] sm:$0xff]  ;;  %v41_v55 = vld [vmem:[%s2143_s1 + $0x98] sm:$0xff]  ;;  %v40_v60 = vld [vmem:[%s2143_s1 + $0x90] sm:$0xff] }
  0x12   :  { %1025 = vmatprep.subr.mxu1 %v78_v29  ;;  %991 = vmatpush3.msra.mxu0 %v30_v33  ;;  %v73_v56 = vld [vmem:[%s2143_s1 + $0x198] sm:$0xff]  ;;  %v289_v57 = vcombine.high %v18_v54, %v18_v54  ;;  %v72_v61 = vld [vmem:[%s2143_s1 + $0x190] sm:$0xff]  ;;  %v296_v62 = vrot.slane %v18_v54, %v1479_v51  ;;  %v39_v1 = vld [vmem:[%s2143_s1 + $0x88] sm:$0xff] }
  0x13   :  { %1026 = vmatpush3.msra.mxu1 %v62_v34  ;;  %992 = vmatprep.subr.mxu0 %v45_v35  ;;  %v25_v58 = vld [vmem:[%s2143_s1 + $0x18] sm:$0xff]  ;;  %v24_v63 = vld [vmem:[%s2143_s1 + $0x10] sm:$0xff]  ;;  %v71_v2 = vld [vmem:[%s2143_s1 + $0x188] sm:$0xff] }
  0x14   :  { %1027 = vmatprep.subr.mxu1 %v77_v36  ;;  %993 = vmatpush3.msra.mxu0 %v29_v37  ;;  %v57_v59 = vld [vmem:[%s2143_s1 + $0x118] sm:$0xff]  ;;  %v56_v0 = vld [vmem:[%s2143_s1 + $0x110] sm:$0xff]  ;;  %v303_v3 = vrot.slane %v289_v57, %v1479_v51  ;;  %v23_v4 = vld [vmem:[%s2143_s1 + $0x8] sm:$0xff]  ;;  %v304_v8 = vcombine.high %v296_v62, %v296_v62 }
  0x15   :  { %1028 = vmatpush3.msra.mxu1 %v61_v38  ;;  %994 = vmatprep.subr.mxu0 %v44_v39  ;;  %v55_v5 = vld [vmem:[%s2143_s1 + $0x108] sm:$0xff]  ;;  %v38_v6 = vld [vmem:[%s2143_s1 + $0x80] sm:$0xff]  ;;  %v117_v12 = vld [vmem:[%s2143_s1 + $0x2f8] sm:$0xff] }
  0x16   :  { %1029 = vmatprep.subr.mxu1 %v76_v40  ;;  %995 = vmatpush3.msra.mxu0 %v28_v43  ;;  %v70_v7 = vld [vmem:[%s2143_s1 + $0x180] sm:$0xff]  ;;  %v305_v11 = vcombine.high %v303_v3, %v303_v3  ;;  %v149_v13 = vld [vmem:[%s2143_s1 + $0x3f8] sm:$0xff]  ;;  %v116_v16 = vld [vmem:[%s2143_s1 + $0x2f0] sm:$0xff] }
  0x17   :  { %1030 = vmatpush3.msra.mxu1 %v60_v44  ;;  %996 = vmatprep.subr.mxu0 %v43_v45  ;;  %v22_v9 = vld [vmem:[%s2143_s1] sm:$0xff]  ;;  %v101_v14 = vld [vmem:[%s2143_s1 + $0x278] sm:$0xff]  ;;  %v148_v17 = vld [vmem:[%s2143_s1 + $0x3f0] sm:$0xff] }
  0x18   :  { %1031 = vmatprep.subr.mxu1 %v75_v46  ;;  %997 = vmatpush3.msra.mxu0 %v27_v47  ;;  %v54_v10 = vld [vmem:[%s2143_s1 + $0x100] sm:$0xff]  ;;  %v133_v15 = vld [vmem:[%s2143_s1 + $0x378] sm:$0xff]  ;;  %v100_v18 = vld [vmem:[%s2143_s1 + $0x270] sm:$0xff] }
  0x19   :  { %1032 = vmatpush3.msra.mxu1 %v59_v48  ;;  %998 = vmatprep.subr.mxu0 %v42_v49  ;;  %v132_v19 = vld [vmem:[%s2143_s1 + $0x370] sm:$0xff]  ;;  %v115_v20 = vld [vmem:[%s2143_s1 + $0x2e8] sm:$0xff]  ;;  %v114_v24 = vld [vmem:[%s2143_s1 + $0x2e0] sm:$0xff] }
  0x1a   :  { %1033 = vmatprep.subr.mxu1 %v74_v50  ;;  %999 = vmatpush3.msra.mxu0 %v26_v52  ;;  %v147_v21 = vld [vmem:[%s2143_s1 + $0x3e8] sm:$0xff]  ;;  %v146_v25 = vld [vmem:[%s2143_s1 + $0x3e0] sm:$0xff]  ;;  %v113_v28 = vld [vmem:[%s2143_s1 + $0x2d8] sm:$0xff] }
  0x1b   :  { %1034 = vmatpush3.msra.mxu1 %v58_v53  ;;  %1000 = vmatprep.subr.mxu0 %v41_v55  ;;  %v99_v22 = vld [vmem:[%s2143_s1 + $0x268] sm:$0xff]  ;;  %v98_v26 = vld [vmem:[%s2143_s1 + $0x260] sm:$0xff]  ;;  %v145_v29 = vld [vmem:[%s2143_s1 + $0x3d8] sm:$0xff] }
  0x1c   :  { %1035 = vmatprep.subr.mxu1 %v73_v56  ;;  %1001 = vmatpush3.msra.mxu0 %v25_v58  ;;  %v131_v23 = vld [vmem:[%s2143_s1 + $0x368] sm:$0xff]  ;;  %v130_v27 = vld [vmem:[%s2143_s1 + $0x360] sm:$0xff]  ;;  %v97_v30 = vld [vmem:[%s2143_s1 + $0x258] sm:$0xff] }
  0x1d   :  { %1036 = vmatpush3.msra.mxu1 %v57_v59  ;;  %1002 = vmatprep.subr.mxu0 %v40_v60  ;;  %v129_v31 = vld [vmem:[%s2143_s1 + $0x358] sm:$0xff]  ;;  %v112_v32 = vld [vmem:[%s2143_s1 + $0x2d0] sm:$0xff]  ;;  %v111_v36 = vld [vmem:[%s2143_s1 + $0x2c8] sm:$0xff] }
  0x1e   :  { %1037 = vmatprep.subr.mxu1 %v72_v61  ;;  %1003 = vmatpush3.msra.mxu0 %v24_v63  ;;  %v144_v33 = vld [vmem:[%s2143_s1 + $0x3d0] sm:$0xff]  ;;  %v143_v37 = vld [vmem:[%s2143_s1 + $0x3c8] sm:$0xff]  ;;  %v110_v40 = vld [vmem:[%s2143_s1 + $0x2c0] sm:$0xff] }
  0x1f   :  { %1038 = vmatpush3.msra.mxu1 %v56_v0  ;;  %1004 = vmatprep.subr.mxu0 %v39_v1  ;;  %v96_v34 = vld [vmem:[%s2143_s1 + $0x250] sm:$0xff]  ;;  %v95_v38 = vld [vmem:[%s2143_s1 + $0x248] sm:$0xff]  ;;  %v142_v41 = vld [vmem:[%s2143_s1 + $0x3c0] sm:$0xff] }
  0x20   :  { %1039 = vmatprep.subr.mxu1 %v71_v2  ;;  %1005 = vmatpush3.msra.mxu0 %v23_v4  ;;  %v128_v35 = vld [vmem:[%s2143_s1 + $0x350] sm:$0xff]  ;;  %v127_v39 = vld [vmem:[%s2143_s1 + $0x348] sm:$0xff]  ;;  %v94_v42 = vld [vmem:[%s2143_s1 + $0x240] sm:$0xff] }
  0x21   :  { %1040 = vmatpush3.msra.mxu1 %v55_v5  ;;  %1006 = vmatprep.subr.mxu0 %v38_v6  ;;  %v126_v43 = vld [vmem:[%s2143_s1 + $0x340] sm:$0xff]  ;;  %v109_v44 = vld [vmem:[%s2143_s1 + $0x2b8] sm:$0xff]  ;;  %v108_v48 = vld [vmem:[%s2143_s1 + $0x2b0] sm:$0xff] }
  0x22   :  { %1041 = vmatprep.subr.mxu1 %v70_v7  ;;  %1007 = vmatpush3.msra.mxu0 %v22_v9  ;;  %v141_v45 = vld [vmem:[%s2143_s1 + $0x3b8] sm:$0xff]  ;;  %v140_v49 = vld [vmem:[%s2143_s1 + $0x3b0] sm:$0xff]  ;;  %v107_v53 = vld [vmem:[%s2143_s1 + $0x2a8] sm:$0xff] }
  0x23   :  { %437 = vmatprep.mubr.f32.mxu0 %v304_v8  ;;  %1042 = vmatpush3.msra.mxu1 %v54_v10  ;;  %v93_v46 = vld [vmem:[%s2143_s1 + $0x238] sm:$0xff]  ;;  %v92_v50 = vld [vmem:[%s2143_s1 + $0x230] sm:$0xff]  ;;  %v139_v54 = vld [vmem:[%s2143_s1 + $0x3a8] sm:$0xff] }
  0x24   :  { %438 = vmatmul.mubr.f32.vlgmr.msra.gmra.mxu0 %v296_v62  ;;  %507 = vmatprep.mubr.f32.mxu1 %v305_v11  ;;  %v125_v47 = vld [vmem:[%s2143_s1 + $0x338] sm:$0xff]  ;;  %v124_v52 = vld [vmem:[%s2143_s1 + $0x330] sm:$0xff]  ;;  %v91_v55 = vld [vmem:[%s2143_s1 + $0x228] sm:$0xff] }
  0x25   :  { %1046 = vmatprep.subr.mxu0 %v117_v12  ;;  %1081 = vmatprep.subr.mxu1 %v149_v13  ;;  %v123_v56 = vld [vmem:[%s2143_s1 + $0x328] sm:$0xff]  ;;  %v106_v58 = vld [vmem:[%s2143_s1 + $0x2a0] sm:$0xff]  ;;  %v105_v62 = vld [vmem:[%s2143_s1 + $0x298] sm:$0xff] }
  0x26   :  { %508 = vmatmul.mubr.f32.vlgmr.msra.gmra.mxu1 %v303_v3  ;;  %1047 = vmatpush3.msra.mxu0 %v101_v14  ;;  %v19_v57 = vld [vmem:[%s2142_s0 + $0x8] sm:$0xff]  ;;  %v138_v59 = vld [vmem:[%s2143_s1 + $0x3a0] sm:$0xff]  ;;  %v137_v63 = vld [vmem:[%s2143_s1 + $0x398] sm:$0xff] }
  0x27   :  { %1082 = vmatpush3.msra.mxu1 %v133_v15  ;;  %1048 = vmatprep.subr.mxu0 %v116_v16  ;;  %v90_v60 = vld [vmem:[%s2143_s1 + $0x220] sm:$0xff]  ;;  %v306_v0 = vcombine.high %v19_v57, %v19_v57  ;;  %v89_v1 = vld [vmem:[%s2143_s1 + $0x218] sm:$0xff]  ;;  %v104_v3 = vld [vmem:[%s2143_s1 + $0x290] sm:$0xff]  ;;  %v313_v5 = vrot.slane %v19_v57, %v1479_v51 }
  0x28   :  { %1083 = vmatprep.subr.mxu1 %v148_v17  ;;  %1049 = vmatpush3.msra.mxu0 %v100_v18  ;;  %v122_v61 = vld [vmem:[%s2143_s1 + $0x320] sm:$0xff]  ;;  %v121_v2 = vld [vmem:[%s2143_s1 + $0x318] sm:$0xff]  ;;  %v136_v4 = vld [vmem:[%s2143_s1 + $0x390] sm:$0xff] }
  0x29   :  { %1084 = vmatpush3.msra.mxu1 %v132_v19  ;;  %1050 = vmatprep.subr.mxu0 %v115_v20  ;;  %v88_v6 = vld [vmem:[%s2143_s1 + $0x210] sm:$0xff]  ;;  %v103_v8 = vld [vmem:[%s2143_s1 + $0x288] sm:$0xff]  ;;  %v320_v10 = vrot.slane %v306_v0, %v1479_v51  ;;  %v102_v13 = vld [vmem:[%s2143_s1 + $0x280] sm:$0xff]  ;;  %v321_v15 = vcombine.high %v313_v5, %v313_v5 }
  0x2a   :  { %1085 = vmatprep.subr.mxu1 %v147_v21  ;;  %1051 = vmatpush3.msra.mxu0 %v99_v22  ;;  %v120_v7 = vld [vmem:[%s2143_s1 + $0x310] sm:$0xff]  ;;  %v135_v9 = vld [vmem:[%s2143_s1 + $0x388] sm:$0xff]  ;;  %v134_v14 = vld [vmem:[%s2143_s1 + $0x380] sm:$0xff] }
  0x2b   :  { %1086 = vmatpush3.msra.mxu1 %v131_v23  ;;  %1052 = vmatprep.subr.mxu0 %v114_v24  ;;  %v87_v11 = vld [vmem:[%s2143_s1 + $0x208] sm:$0xff]  ;;  %v86_v16 = vld [vmem:[%s2143_s1 + $0x200] sm:$0xff]  ;;  %v322_v18 = vcombine.high %v320_v10, %v320_v10  ;;  %v181_v19 = vld [vmem:[%s2143_s1 + $0x4f8] sm:$0xff] }
  0x2c   :  { %1087 = vmatprep.subr.mxu1 %v146_v25  ;;  %1053 = vmatpush3.msra.mxu0 %v98_v26  ;;  %v119_v12 = vld [vmem:[%s2143_s1 + $0x308] sm:$0xff]  ;;  %v118_v17 = vld [vmem:[%s2143_s1 + $0x300] sm:$0xff]  ;;  %v213_v20 = vld [vmem:[%s2143_s1 + $0x5f8] sm:$0xff] }
  0x2d   :  { %1088 = vmatpush3.msra.mxu1 %v130_v27  ;;  %1054 = vmatprep.subr.mxu0 %v113_v28  ;;  %v165_v21 = vld [vmem:[%s2143_s1 + $0x478] sm:$0xff]  ;;  %v180_v23 = vld [vmem:[%s2143_s1 + $0x4f0] sm:$0xff]  ;;  %v179_v27 = vld [vmem:[%s2143_s1 + $0x4e8] sm:$0xff] }
  0x2e   :  { %1089 = vmatprep.subr.mxu1 %v145_v29  ;;  %1055 = vmatpush3.msra.mxu0 %v97_v30  ;;  %v197_v22 = vld [vmem:[%s2143_s1 + $0x578] sm:$0xff]  ;;  %v212_v24 = vld [vmem:[%s2143_s1 + $0x5f0] sm:$0xff]  ;;  %v211_v28 = vld [vmem:[%s2143_s1 + $0x5e8] sm:$0xff] }
  0x2f   :  { %1090 = vmatpush3.msra.mxu1 %v129_v31  ;;  %1056 = vmatprep.subr.mxu0 %v112_v32  ;;  %v164_v25 = vld [vmem:[%s2143_s1 + $0x470] sm:$0xff]  ;;  %v163_v29 = vld [vmem:[%s2143_s1 + $0x468] sm:$0xff]  ;;  %v178_v31 = vld [vmem:[%s2143_s1 + $0x4e0] sm:$0xff] }
  0x30   :  { %1091 = vmatprep.subr.mxu1 %v144_v33  ;;  %1057 = vmatpush3.msra.mxu0 %v96_v34  ;;  %v196_v26 = vld [vmem:[%s2143_s1 + $0x570] sm:$0xff]  ;;  %v195_v30 = vld [vmem:[%s2143_s1 + $0x568] sm:$0xff]  ;;  %v210_v32 = vld [vmem:[%s2143_s1 + $0x5e0] sm:$0xff] }
  0x31   :  { %1092 = vmatpush3.msra.mxu1 %v128_v35  ;;  %1058 = vmatprep.subr.mxu0 %v111_v36  ;;  %v162_v33 = vld [vmem:[%s2143_s1 + $0x460] sm:$0xff]  ;;  %v177_v35 = vld [vmem:[%s2143_s1 + $0x4d8] sm:$0xff]  ;;  %v204_v57 = vld [vmem:[%s2143_s1 + $0x5b0] sm:$0xff] }
  0x32   :  { %1093 = vmatprep.subr.mxu1 %v143_v37  ;;  %1059 = vmatpush3.msra.mxu0 %v95_v38  ;;  %v194_v34 = vld [vmem:[%s2143_s1 + $0x560] sm:$0xff]  ;;  %v209_v36 = vld [vmem:[%s2143_s1 + $0x5d8] sm:$0xff] }
  0x33   :  { %1094 = vmatpush3.msra.mxu1 %v127_v39  ;;  %1060 = vmatprep.subr.mxu0 %v110_v40  ;;  %v161_v37 = vld [vmem:[%s2143_s1 + $0x458] sm:$0xff]  ;;  %v176_v39 = vld [vmem:[%s2143_s1 + $0x4d0] sm:$0xff] }
  0x34   :  { %1095 = vmatprep.subr.mxu1 %v142_v41  ;;  %1061 = vmatpush3.msra.mxu0 %v94_v42  ;;  %v193_v38 = vld [vmem:[%s2143_s1 + $0x558] sm:$0xff]  ;;  %v208_v40 = vld [vmem:[%s2143_s1 + $0x5d0] sm:$0xff] }
  0x35   :  { %1096 = vmatpush3.msra.mxu1 %v126_v43  ;;  %1062 = vmatprep.subr.mxu0 %v109_v44  ;;  %v160_v41 = vld [vmem:[%s2143_s1 + $0x450] sm:$0xff]  ;;  %v175_v43 = vld [vmem:[%s2143_s1 + $0x4c8] sm:$0xff] }
  0x36   :  { %1097 = vmatprep.subr.mxu1 %v141_v45  ;;  %1063 = vmatpush3.msra.mxu0 %v93_v46  ;;  %v192_v42 = vld [vmem:[%s2143_s1 + $0x550] sm:$0xff]  ;;  %v207_v44 = vld [vmem:[%s2143_s1 + $0x5c8] sm:$0xff] }
  0x37   :  { %1098 = vmatpush3.msra.mxu1 %v125_v47  ;;  %1064 = vmatprep.subr.mxu0 %v108_v48  ;;  %v159_v45 = vld [vmem:[%s2143_s1 + $0x448] sm:$0xff]  ;;  %v174_v47 = vld [vmem:[%s2143_s1 + $0x4c0] sm:$0xff] }
  0x38   :  { %1099 = vmatprep.subr.mxu1 %v140_v49  ;;  %1065 = vmatpush3.msra.mxu0 %v92_v50  ;;  %v191_v46 = vld [vmem:[%s2143_s1 + $0x548] sm:$0xff]  ;;  %v206_v48 = vld [vmem:[%s2143_s1 + $0x5c0] sm:$0xff] }
  0x39   :  { %1100 = vmatpush3.msra.mxu1 %v124_v52  ;;  %1066 = vmatprep.subr.mxu0 %v107_v53  ;;  %v158_v49 = vld [vmem:[%s2143_s1 + $0x440] sm:$0xff]  ;;  %v173_v52 = vld [vmem:[%s2143_s1 + $0x4b8] sm:$0xff] }
  0x3a   :  { %1101 = vmatprep.subr.mxu1 %v139_v54  ;;  %1067 = vmatpush3.msra.mxu0 %v91_v55  ;;  %v190_v50 = vld [vmem:[%s2143_s1 + $0x540] sm:$0xff]  ;;  %v205_v53 = vld [vmem:[%s2143_s1 + $0x5b8] sm:$0xff] }
  0x3b   :  { %1102 = vmatpush3.msra.mxu1 %v123_v56  ;;  %1068 = vmatprep.subr.mxu0 %v106_v58  ;;  %v157_v54 = vld [vmem:[%s2143_s1 + $0x438] sm:$0xff]  ;;  %v172_v56 = vld [vmem:[%s2143_s1 + $0x4b0] sm:$0xff] }
  0x3c   :  { %1103 = vmatprep.subr.mxu1 %v138_v59  ;;  %1069 = vmatpush3.msra.mxu0 %v90_v60  ;;  %v189_v55 = vld [vmem:[%s2143_s1 + $0x538] sm:$0xff]  ;;  %v156_v58 = vld [vmem:[%s2143_s1 + $0x430] sm:$0xff]  ;;  %v171_v60 = vld [vmem:[%s2143_s1 + $0x4a8] sm:$0xff] }
  0x3d   :  { %1104 = vmatpush3.msra.mxu1 %v122_v61  ;;  %1070 = vmatprep.subr.mxu0 %v105_v62  ;;  %v188_v59 = vld [vmem:[%s2143_s1 + $0x530] sm:$0xff]  ;;  %v203_v61 = vld [vmem:[%s2143_s1 + $0x5a8] sm:$0xff] }
  0x3e   :  { %1105 = vmatprep.subr.mxu1 %v137_v63  ;;  %1071 = vmatpush3.msra.mxu0 %v89_v1 }
  0x3f   :  { %1106 = vmatpush3.msra.mxu1 %v121_v2  ;;  %1072 = vmatprep.subr.mxu0 %v104_v3 }
  0x40   :  { %1107 = vmatprep.subr.mxu1 %v136_v4  ;;  %1073 = vmatpush3.msra.mxu0 %v88_v6 }
  0x41   :  { %1108 = vmatpush3.msra.mxu1 %v120_v7  ;;  %1074 = vmatprep.subr.mxu0 %v103_v8 }
  0x42   :  { %1109 = vmatprep.subr.mxu1 %v135_v9  ;;  %1075 = vmatpush3.msra.mxu0 %v87_v11 }
  0x43   :  { %1110 = vmatpush3.msra.mxu1 %v119_v12  ;;  %1076 = vmatprep.subr.mxu0 %v102_v13 }
  0x44   :  { %1111 = vmatprep.subr.mxu1 %v134_v14  ;;  %1077 = vmatpush3.msra.mxu0 %v86_v16 }
  0x45   :  { %577 = vmatprep.mubr.f32.mxu0 %v321_v15  ;;  %1112 = vmatpush3.msra.mxu1 %v118_v17 }
  0x46   :  { %578 = vmatmul.mubr.f32.vlgmr.msra.gmra.mxu0 %v313_v5  ;;  %647 = vmatprep.mubr.f32.mxu1 %v322_v18 }
  0x47   :  { %1116 = vmatprep.subr.mxu0 %v181_v19  ;;  %1151 = vmatprep.subr.mxu1 %v213_v20 }
  0x48   :  { %648 = vmatmul.mubr.f32.vlgmr.msra.gmra.mxu1 %v320_v10  ;;  %1117 = vmatpush3.msra.mxu0 %v165_v21 }
  0x49   :  { %1152 = vmatpush3.msra.mxu1 %v197_v22  ;;  %1118 = vmatprep.subr.mxu0 %v180_v23 }
  0x4a   :  { %1153 = vmatprep.subr.mxu1 %v212_v24  ;;  %1119 = vmatpush3.msra.mxu0 %v164_v25 }
  0x4b   :  { %1154 = vmatpush3.msra.mxu1 %v196_v26  ;;  %1120 = vmatprep.subr.mxu0 %v179_v27 }
  0x4c   :  { %1155 = vmatprep.subr.mxu1 %v211_v28  ;;  %1121 = vmatpush3.msra.mxu0 %v163_v29 }
  0x4d   :  { %1156 = vmatpush3.msra.mxu1 %v195_v30  ;;  %1122 = vmatprep.subr.mxu0 %v178_v31 }
  0x4e   :  { %1157 = vmatprep.subr.mxu1 %v210_v32  ;;  %1123 = vmatpush3.msra.mxu0 %v162_v33 }
  0x4f   :  { %1158 = vmatpush3.msra.mxu1 %v194_v34  ;;  %1124 = vmatprep.subr.mxu0 %v177_v35 }
  0x50   :  { %1159 = vmatprep.subr.mxu1 %v209_v36  ;;  %1125 = vmatpush3.msra.mxu0 %v161_v37 }
  0x51   :  { %1160 = vmatpush3.msra.mxu1 %v193_v38  ;;  %1126 = vmatprep.subr.mxu0 %v176_v39 }
  0x52   :  { %1161 = vmatprep.subr.mxu1 %v208_v40  ;;  %1127 = vmatpush3.msra.mxu0 %v160_v41 }
  0x53   :  { %1162 = vmatpush3.msra.mxu1 %v192_v42  ;;  %1128 = vmatprep.subr.mxu0 %v175_v43 }
  0x54   :  { %1163 = vmatprep.subr.mxu1 %v207_v44  ;;  %1129 = vmatpush3.msra.mxu0 %v159_v45 }
  0x55   :  { %1164 = vmatpush3.msra.mxu1 %v191_v46  ;;  %1130 = vmatprep.subr.mxu0 %v174_v47 }
  0x56   :  { %1165 = vmatprep.subr.mxu1 %v206_v48  ;;  %1131 = vmatpush3.msra.mxu0 %v158_v49 }
  0x57   :  { %1166 = vmatpush3.msra.mxu1 %v190_v50  ;;  %1132 = vmatprep.subr.mxu0 %v173_v52 }
  0x58   :  { %1167 = vmatprep.subr.mxu1 %v205_v53  ;;  %1133 = vmatpush3.msra.mxu0 %v157_v54 }
  0x59   :  { %1168 = vmatpush3.msra.mxu1 %v189_v55 }
  0x5a   :  { %11 = vsyncpa [#allocation5], 0  ;;  %1134 = vmatprep.subr.mxu0 %v172_v56  ;;  %1169 = vmatprep.subr.mxu1 %v204_v57  ;;  %v155_v62 = vld [vmem:[%s2143_s1 + $0x428] sm:$0xff]  ;;  %v20_v0 = vld [vmem:[%s2142_s0 + $0x10] sm:$0xff]  ;;  %vm934_vm0 = vcmask 386048  }
  0x5b   :  { %v187_v63 = vld [vmem:[%s2143_s1 + $0x528] sm:$0xff]  ;;  %1135 = vmatpush3.msra.mxu0 %v156_v58  ;;  %1170 = vmatpush3.msra.mxu1 %v188_v59  ;;  %v170_v1 = vld [vmem:[%s2143_s1 + $0x4a0] sm:$0xff]  ;;  %v169_v5 = vld [vmem:[%s2143_s1 + $0x498] sm:$0xff]  ;;  %v323_v7 = vcombine.high %v20_v0, %v20_v0  ;;  %v330_v12 = vrot.slane %v20_v0, %v1479_v51 }
  0x5c   :  { %v202_v2 = vld [vmem:[%s2143_s1 + $0x5a0] sm:$0xff]  ;;  %1136 = vmatprep.subr.mxu0 %v171_v60  ;;  %1171 = vmatprep.subr.mxu1 %v203_v61  ;;  %v201_v6 = vld [vmem:[%s2143_s1 + $0x598] sm:$0xff]  ;;  %v168_v10 = vld [vmem:[%s2143_s1 + $0x490] sm:$0xff] }
  0x5d   :  { %v154_v3 = vld [vmem:[%s2143_s1 + $0x420] sm:$0xff]  ;;  %1137 = vmatpush3.msra.mxu0 %v155_v62  ;;  %1172 = vmatpush3.msra.mxu1 %v187_v63  ;;  %v153_v8 = vld [vmem:[%s2143_s1 + $0x418] sm:$0xff]  ;;  %v200_v11 = vld [vmem:[%s2143_s1 + $0x590] sm:$0xff]  ;;  %v337_v17 = vrot.slane %v323_v7, %v1479_v51  ;;  %v338_v22 = vcombine.high %v330_v12, %v330_v12 }
  0x5e   :  { %v186_v4 = vld [vmem:[%s2143_s1 + $0x520] sm:$0xff]  ;;  %1138 = vmatprep.subr.mxu0 %v170_v1  ;;  %1173 = vmatprep.subr.mxu1 %v202_v2  ;;  %v185_v9 = vld [vmem:[%s2143_s1 + $0x518] sm:$0xff]  ;;  %v152_v13 = vld [vmem:[%s2143_s1 + $0x410] sm:$0xff] }
  0x5f   :  { %1139 = vmatpush3.msra.mxu0 %v154_v3  ;;  %1174 = vmatpush3.msra.mxu1 %v186_v4  ;;  %v184_v14 = vld [vmem:[%s2143_s1 + $0x510] sm:$0xff]  ;;  %v167_v15 = vld [vmem:[%s2143_s1 + $0x488] sm:$0xff]  ;;  %v166_v20 = vld [vmem:[%s2143_s1 + $0x480] sm:$0xff]  ;;  %v339_v25 = vcombine.high %v337_v17, %v337_v17 }
  0x60   :  { %1140 = vmatprep.subr.mxu0 %v169_v5  ;;  %1175 = vmatprep.subr.mxu1 %v201_v6  ;;  %v199_v16 = vld [vmem:[%s2143_s1 + $0x588] sm:$0xff]  ;;  %v198_v21 = vld [vmem:[%s2143_s1 + $0x580] sm:$0xff]  ;;  %v245_v26 = vld [vmem:[%s2143_s1 + $0x6f8] sm:$0xff] }
  0x61   :  { %1141 = vmatpush3.msra.mxu0 %v153_v8  ;;  %1176 = vmatpush3.msra.mxu1 %v185_v9  ;;  %v151_v18 = vld [vmem:[%s2143_s1 + $0x408] sm:$0xff]  ;;  %v150_v23 = vld [vmem:[%s2143_s1 + $0x400] sm:$0xff]  ;;  %v277_v27 = vld [vmem:[%s2143_s1 + $0x7f8] sm:$0xff] }
  0x62   :  { %1142 = vmatprep.subr.mxu0 %v168_v10  ;;  %1177 = vmatprep.subr.mxu1 %v200_v11  ;;  %v183_v19 = vld [vmem:[%s2143_s1 + $0x508] sm:$0xff]  ;;  %v182_v24 = vld [vmem:[%s2143_s1 + $0x500] sm:$0xff]  ;;  %v229_v28 = vld [vmem:[%s2143_s1 + $0x678] sm:$0xff] }
  0x63   :  { %1143 = vmatpush3.msra.mxu0 %v152_v13  ;;  %1178 = vmatpush3.msra.mxu1 %v184_v14  ;;  %v261_v29 = vld [vmem:[%s2143_s1 + $0x778] sm:$0xff]  ;;  %v244_v30 = vld [vmem:[%s2143_s1 + $0x6f0] sm:$0xff]  ;;  %v243_v34 = vld [vmem:[%s2143_s1 + $0x6e8] sm:$0xff] }
  0x64   :  { %1144 = vmatprep.subr.mxu0 %v167_v15  ;;  %1179 = vmatprep.subr.mxu1 %v199_v16  ;;  %v276_v31 = vld [vmem:[%s2143_s1 + $0x7f0] sm:$0xff]  ;;  %v275_v35 = vld [vmem:[%s2143_s1 + $0x7e8] sm:$0xff]  ;;  %v242_v38 = vld [vmem:[%s2143_s1 + $0x6e0] sm:$0xff] }
  0x65   :  { %1145 = vmatpush3.msra.mxu0 %v151_v18  ;;  %1180 = vmatpush3.msra.mxu1 %v183_v19  ;;  %v228_v32 = vld [vmem:[%s2143_s1 + $0x670] sm:$0xff]  ;;  %v227_v36 = vld [vmem:[%s2143_s1 + $0x668] sm:$0xff]  ;;  %v274_v39 = vld [vmem:[%s2143_s1 + $0x7e0] sm:$0xff] }
  0x66   :  { %1146 = vmatprep.subr.mxu0 %v166_v20  ;;  %1181 = vmatprep.subr.mxu1 %v198_v21  ;;  %v260_v33 = vld [vmem:[%s2143_s1 + $0x770] sm:$0xff]  ;;  %v259_v37 = vld [vmem:[%s2143_s1 + $0x768] sm:$0xff]  ;;  %v226_v40 = vld [vmem:[%s2143_s1 + $0x660] sm:$0xff] }
  0x67   :  { %1147 = vmatpush3.msra.mxu0 %v150_v23  ;;  %717 = vmatprep.mubr.f32.mxu0 %v338_v22  ;;  %v258_v41 = vld [vmem:[%s2143_s1 + $0x760] sm:$0xff]  ;;  %v241_v42 = vld [vmem:[%s2143_s1 + $0x6d8] sm:$0xff]  ;;  %v240_v46 = vld [vmem:[%s2143_s1 + $0x6d0] sm:$0xff] }
  0x68   :  { %1182 = vmatpush3.msra.mxu1 %v182_v24  ;;  %718 = vmatmul.mubr.f32.vlgmr.msra.gmra.mxu0 %v330_v12  ;;  %v273_v43 = vld [vmem:[%s2143_s1 + $0x7d8] sm:$0xff]  ;;  %v272_v47 = vld [vmem:[%s2143_s1 + $0x7d0] sm:$0xff]  ;;  %v239_v50 = vld [vmem:[%s2143_s1 + $0x6c8] sm:$0xff] }
  0x69   :  { %787 = vmatprep.mubr.f32.mxu1 %v339_v25  ;;  %1186 = vmatprep.subr.mxu0 %v245_v26  ;;  %v225_v44 = vld [vmem:[%s2143_s1 + $0x658] sm:$0xff]  ;;  %v224_v48 = vld [vmem:[%s2143_s1 + $0x650] sm:$0xff]  ;;  %v271_v52 = vld [vmem:[%s2143_s1 + $0x7c8] sm:$0xff] }
  0x6a   :  { %1221 = vmatprep.subr.mxu1 %v277_v27  ;;  %788 = vmatmul.mubr.f32.vlgmr.msra.gmra.mxu1 %v337_v17  ;;  %v257_v45 = vld [vmem:[%s2143_s1 + $0x758] sm:$0xff]  ;;  %v256_v49 = vld [vmem:[%s2143_s1 + $0x750] sm:$0xff]  ;;  %v223_v53 = vld [vmem:[%s2143_s1 + $0x648] sm:$0xff] }
  0x6b   :  { %1187 = vmatpush3.msra.mxu0 %v229_v28  ;;  %1222 = vmatpush3.msra.mxu1 %v261_v29  ;;  %v255_v54 = vld [vmem:[%s2143_s1 + $0x748] sm:$0xff]  ;;  %v238_v55 = vld [vmem:[%s2143_s1 + $0x6c0] sm:$0xff]  ;;  %v237_v59 = vld [vmem:[%s2143_s1 + $0x6b8] sm:$0xff] }
  0x6c   :  { %1188 = vmatprep.subr.mxu0 %v244_v30  ;;  %1223 = vmatprep.subr.mxu1 %v276_v31  ;;  %v270_v56 = vld [vmem:[%s2143_s1 + $0x7c0] sm:$0xff]  ;;  %v269_v60 = vld [vmem:[%s2143_s1 + $0x7b8] sm:$0xff]  ;;  %v236_v63 = vld [vmem:[%s2143_s1 + $0x6b0] sm:$0xff] }
  0x6d   :  { %1189 = vmatpush3.msra.mxu0 %v228_v32  ;;  %1224 = vmatpush3.msra.mxu1 %v260_v33  ;;  %v222_v57 = vld [vmem:[%s2143_s1 + $0x640] sm:$0xff]  ;;  %v221_v61 = vld [vmem:[%s2143_s1 + $0x638] sm:$0xff]  ;;  %v268_v0 = vld [vmem:[%s2143_s1 + $0x7b0] sm:$0xff] }
  0x6e   :  { %1190 = vmatprep.subr.mxu0 %v243_v34  ;;  %1225 = vmatprep.subr.mxu1 %v275_v35  ;;  %v254_v58 = vld [vmem:[%s2143_s1 + $0x740] sm:$0xff]  ;;  %v253_v62 = vld [vmem:[%s2143_s1 + $0x738] sm:$0xff]  ;;  %v220_v1 = vld [vmem:[%s2143_s1 + $0x630] sm:$0xff] }
  0x6f   :  { %1191 = vmatpush3.msra.mxu0 %v227_v36  ;;  %1226 = vmatpush3.msra.mxu1 %v259_v37  ;;  %v252_v2 = vld [vmem:[%s2143_s1 + $0x730] sm:$0xff]  ;;  %v235_v3 = vld [vmem:[%s2143_s1 + $0x6a8] sm:$0xff]  ;;  %v21_v5 = vld [vmem:[%s2142_s0 + $0x18] sm:$0xff] }
  0x70   :  { %1192 = vmatprep.subr.mxu0 %v242_v38  ;;  %1227 = vmatprep.subr.mxu1 %v274_v39  ;;  %v267_v4 = vld [vmem:[%s2143_s1 + $0x7a8] sm:$0xff]  ;;  %v234_v8 = vld [vmem:[%s2143_s1 + $0x6a0] sm:$0xff]  ;;  %v340_v12 = vcombine.high %v21_v5, %v21_v5  ;;  %v233_v13 = vld [vmem:[%s2143_s1 + $0x698] sm:$0xff]  ;;  %v347_v19 = vrot.slane %v21_v5, %v1479_v51 }
  0x71   :  { %1193 = vmatpush3.msra.mxu0 %v226_v40  ;;  %1228 = vmatpush3.msra.mxu1 %v258_v41  ;;  %v219_v6 = vld [vmem:[%s2143_s1 + $0x628] sm:$0xff]  ;;  %v266_v9 = vld [vmem:[%s2143_s1 + $0x7a0] sm:$0xff]  ;;  %v265_v14 = vld [vmem:[%s2143_s1 + $0x798] sm:$0xff] }
  0x72   :  { %1194 = vmatprep.subr.mxu0 %v241_v42  ;;  %1229 = vmatprep.subr.mxu1 %v273_v43  ;;  %v251_v7 = vld [vmem:[%s2143_s1 + $0x728] sm:$0xff]  ;;  %v218_v10 = vld [vmem:[%s2143_s1 + $0x620] sm:$0xff]  ;;  %v217_v15 = vld [vmem:[%s2143_s1 + $0x618] sm:$0xff]  ;;  %v354_v22 = vrot.slane %v340_v12, %v1479_v51  ;;  %v355_v28 = vcombine.high %v347_v19, %v347_v19 }
  0x73   :  { %1195 = vmatpush3.msra.mxu0 %v225_v44  ;;  %1230 = vmatpush3.msra.mxu1 %v257_v45  ;;  %v250_v11 = vld [vmem:[%s2143_s1 + $0x720] sm:$0xff]  ;;  %v249_v16 = vld [vmem:[%s2143_s1 + $0x718] sm:$0xff]  ;;  %v232_v17 = vld [vmem:[%s2143_s1 + $0x690] sm:$0xff] }
  0x74   :  { %1196 = vmatprep.subr.mxu0 %v240_v46  ;;  %1231 = vmatprep.subr.mxu1 %v272_v47  ;;  %v264_v18 = vld [vmem:[%s2143_s1 + $0x790] sm:$0xff]  ;;  %v231_v23 = vld [vmem:[%s2143_s1 + $0x688] sm:$0xff]  ;;  %v230_v26 = vld [vmem:[%s2143_s1 + $0x680] sm:$0xff]  ;;  %v356_v30 = vcombine.high %v354_v22, %v354_v22 }
  0x75   :  { %1197 = vmatpush3.msra.mxu0 %v224_v48  ;;  %1232 = vmatpush3.msra.mxu1 %v256_v49  ;;  %v216_v20 = vld [vmem:[%s2143_s1 + $0x610] sm:$0xff]  ;;  %v263_v24 = vld [vmem:[%s2143_s1 + $0x788] sm:$0xff]  ;;  %v262_v27 = vld [vmem:[%s2143_s1 + $0x780] sm:$0xff] }
  0x76   :  { %1198 = vmatprep.subr.mxu0 %v239_v50  ;;  %1233 = vmatprep.subr.mxu1 %v271_v52  ;;  %v248_v21 = vld [vmem:[%s2143_s1 + $0x710] sm:$0xff]  ;;  %v215_v25 = vld [vmem:[%s2143_s1 + $0x608] sm:$0xff]  ;;  %v214_v29 = vld [vmem:[%s2143_s1 + $0x600] sm:$0xff] }
  0x77   :  { %1199 = vmatpush3.msra.mxu0 %v223_v53  ;;  %1234 = vmatpush3.msra.mxu1 %v255_v54  ;;  %v247_v51 = vld [vmem:[%s2143_s1 + $0x708] sm:$0xff]  ;;  %v246_v31 = vld [vmem:[%s2143_s1 + $0x700] sm:$0xff]  ;;  %s1314_s1 = smov [#allocation2]  }
  0x78   :  { %1200 = vmatprep.subr.mxu0 %v238_v55  ;;  %1235 = vmatprep.subr.mxu1 %v270_v56  ;;  %v975_v37 = vld [vmem:[%s2144_s2] ss:$0 sm:$0xff]  ;;  %s953_s2 = sshll.u32 %s1314_s1, 4  ;;  %s954_s2 = int_to_ptr.vmem [resolvable:$true] %s953_s2 }
  0x79   :  { %1201 = vmatpush3.msra.mxu0 %v222_v57  ;;  %1236 = vmatpush3.msra.mxu1 %v254_v58  ;;  %s1269_s15 = scalar_lea.vmem %s954_s2, 32  ;;  %p1274_p1 = scmp.lt.s32.totalorder %s954_s2, %s954_s2 }
  0x7a   :  { %1202 = vmatprep.subr.mxu0 %v237_v59  ;;  %1237 = vmatprep.subr.mxu1 %v269_v60  ;;  %p1270_p0 = scmp.ne.s32.totalorder %s954_s2, %s1269_s15  ;;  %p1275_p2 = scmp.lt.s32.totalorder %s1269_s15, %s1269_s15 }
  0x7b   :  { %1203 = vmatpush3.msra.mxu0 %v221_v61  ;;  %1238 = vmatpush3.msra.mxu1 %v253_v62 }
  0x7c   :  { %1204 = vmatprep.subr.mxu0 %v236_v63  ;;  %1239 = vmatprep.subr.mxu1 %v268_v0  ;;  %p1276_p3 = por %p1275_p2, %p1274_p1 }
  0x7d   :  { %1205 = vmatpush3.msra.mxu0 %v220_v1  ;;  %1240 = vmatpush3.msra.mxu1 %v252_v2 }
  0x7e   :  { %1206 = vmatprep.subr.mxu0 %v235_v3  ;;  %1241 = vmatprep.subr.mxu1 %v267_v4  ;;  %p1277_p4 = pnand %p1276_p3, %p1270_p0 }
  0x7f   :  { %1207 = vmatpush3.msra.mxu0 %v219_v6  ;;  %1242 = vmatpush3.msra.mxu1 %v251_v7 }
  0x80   :  { %1208 = vmatprep.subr.mxu0 %v234_v8  ;;  %1243 = vmatprep.subr.mxu1 %v266_v9 }
  0x81   :  { %1209 = vmatpush3.msra.mxu0 %v218_v10  ;;  %1244 = vmatpush3.msra.mxu1 %v250_v11 }
  0x82   :  { %1210 = vmatprep.subr.mxu0 %v233_v13  ;;  %1245 = vmatprep.subr.mxu1 %v265_v14 }
  0x83   :  { %1211 = vmatpush3.msra.mxu0 %v217_v15  ;;  %1246 = vmatpush3.msra.mxu1 %v249_v16 }
  0x84   :  { %1212 = vmatprep.subr.mxu0 %v232_v17  ;;  %1247 = vmatprep.subr.mxu1 %v264_v18 }
  0x85   :  { %1213 = vmatpush3.msra.mxu0 %v216_v20  ;;  %1248 = vmatpush3.msra.mxu1 %v248_v21 }
  0x86   :  { %1214 = vmatprep.subr.mxu0 %v231_v23  ;;  %1249 = vmatprep.subr.mxu1 %v263_v24 }
  0x87   :  { %1215 = vmatpush3.msra.mxu0 %v215_v25  ;;  %1250 = vmatpush3.msra.mxu1 %v247_v51 }
  0x88   :  { %1216 = vmatprep.subr.mxu0 %v230_v26  ;;  %1251 = vmatprep.subr.mxu1 %v262_v27 }
  0x89   :  { %1217 = vmatpush3.msra.mxu0 %v214_v29  ;;  %857 = vmatprep.mubr.f32.mxu0 %v355_v28 }
  0x8a   :  { %1252 = vmatpush3.msra.mxu1 %v246_v31  ;;  %927 = vmatprep.mubr.f32.mxu1 %v356_v30 }
  0x8b   :  { %858 = vmatmul.mubr.f32.vlgmr.msra.gmra.mxu0 %v347_v19  ;;  %928 = vmatmul.mubr.f32.vlgmr.msra.gmra.mxu1 %v354_v22 }
  0xe4   :  { %v1008_v32 = vpop.f32.mrf.mxu0 }
  0xe6   :  { %v1043_v33 = vpop.f32.mrf.mxu1  ;;  %v1009_v34 = vpop.f32.mrf.mxu0 }
  0xe7   :  { %v1010_v36 = vadd.f32 %v1009_v34, %v1008_v32 }
  0xe8   :  { %v1044_v38 = vpop.f32.mrf.mxu1 }
  0xe9   :  { %v440_v41 = vadd.f32 %v1010_v36, %v975_v37  ;;  %v1045_v42 = vadd.f32 %v1044_v38, %v1043_v33 }
  0xeb   :  { %v510_v46 = vadd.f32 %v1045_v42, %v440_v41 }
 0x106   :  { %v1078_v35 = vpop.f32.mrf.mxu0 }
 0x108   :  { %v1113_v39 = vpop.f32.mrf.mxu1  ;;  %v1079_v40 = vpop.f32.mrf.mxu0 }
 0x109   :  { %v1080_v44 = vadd.f32 %v1079_v40, %v1078_v35 }
 0x10a   :  { %v1114_v45 = vpop.f32.mrf.mxu1 }
 0x10b   :  { %v580_v49 = vadd.f32 %v1080_v44, %v510_v46  ;;  %v1115_v50 = vadd.f32 %v1114_v45, %v1113_v39 }
 0x10d   :  { %v650_v54 = vadd.f32 %v1115_v50, %v580_v49 }
 0x128   :  { %v1148_v43 = vpop.f32.mrf.mxu0 }
 0x12a   :  { %v1183_v47 = vpop.f32.mrf.mxu1  ;;  %v1149_v48 = vpop.f32.mrf.mxu0 }
 0x12b   :  { %v1150_v52 = vadd.f32 %v1149_v48, %v1148_v43 }
 0x12c   :  { %v1184_v53 = vpop.f32.mrf.mxu1 }
 0x12d   :  { %v720_v55 = vadd.f32 %v1150_v52, %v650_v54  ;;  %v1185_v56 = vadd.f32 %v1184_v53, %v1183_v47 }
 0x12f   :  { %v790_v61 = vadd.f32 %v1185_v56, %v720_v55 }
 0x14b   :  { %v1218_v57 = vpop.f32.mrf.mxu0  ;;  %v1253_v58 = vpop.f32.mrf.mxu1 }
 0x14d   :  { %v1219_v59 = vpop.f32.mrf.mxu0  ;;  %v1254_v60 = vpop.f32.mrf.mxu1 }
 0x14e   :  { %v1220_v62 = vadd.f32 %v1219_v59, %v1218_v57  ;;  %v1255_v0 = vadd.f32 %v1254_v60, %v1253_v58 }
 0x150   :  { %v860_v63 = vadd.f32 %v1220_v62, %v790_v61 }
 0x152   :  { %v930_v1 = vadd.f32 %v1255_v0, %v860_v63 }
 0x154   :  { %1263 = vtanh.f32 %v930_v1 }
 0x161   :  { %v1264_v2 = vpop.eup %1263 }
 0x162   :  { %v936_v3 = vmul.f32 1.442695, %v1264_v2  ;;  %935 = vst.msk [vmem:[#allocation2] sm:$0x3] %vm934_vm0, %v1264_v2 }
 0x163   :  { %1280 = shalt.err (!%p1277_p4)
}
 0x164   :  { %956 = dma.vmem_to_hbm [thread:$0]  %s954_s2, 32, %s2145_s3, [#allocation3]   ;;  %1265 = vpow2.f32 %v936_v3 }
 0x165   :  { %s1315_s18 = smov [#allocation4]  }
 0x166   :  { %s963_s19 = sshll.u32 %s1315_s18, 4  ;;  %s964_s19 = int_to_ptr.vmem [resolvable:$true] %s963_s19 }
 0x167   :  { %s1289_s20 = scalar_lea.vmem %s964_s19, 32  ;;  %p1294_p6 = scmp.lt.s32.totalorder %s964_s19, %s964_s19 }
 0x168   :  { %p1290_p5 = scmp.ne.s32.totalorder %s964_s19, %s1289_s20  ;;  %p1295_p7 = scmp.lt.s32.totalorder %s1289_s20, %s1289_s20 }
 0x16a   :  { %p1296_p8 = por %p1295_p7, %p1294_p6 }
 0x16c   :  { %p1297_p9 = pnand %p1296_p8, %p1290_p5 }
 0x171   :  { %v1266_v4 = vpop.eup %1265 }
 0x172   :  { %v938_v5 = vadd.f32 1e-09, %v1266_v4 }
 0x174   :  { %1267 = vrsqrt.f32 %v938_v5  ;;  %vm941_vm1 = vcmp.eq.f32.partialorder %v938_v5, inf  ;;  %v944_v8 = vand.u32 2147483648, %v938_v5  ;;  %vm943_vm2 = vcmp.eq.f32.partialorder %v938_v5, 0.0 }
 0x181   :  { %v1268_v6 = vpop.eup %1267 }
 0x182   :  { %v940_v7 = vmul.f32 %v1268_v6, %v938_v5 }
 0x184   :  { %v942_v9 = vsel %vm941_vm1, %v938_v5, %v940_v7 }
 0x185   :  { %v945_v10 = vsel %vm943_vm2, %v944_v8, %v942_v9 }
 0x186   :  { %946 = vst.msk [vmem:[#allocation4] sm:$0x3] %vm934_vm0, %v945_v10 }
 0x187   :  { %1300 = shalt.err (!%p1297_p9)
}
 0x188   :  { %966 = dma.vmem_to_hbm [thread:$0]  %s964_s19, 32, %s2146_s4, [#allocation5]  }
 0x189   :  { %1309 = dma.done.wait [#allocation3], 32  }
 0x18a   :  { %1310 = vsyncadd [#allocation3], 4294967264 }
 0x18b   :  { %1311 = dma.done.wait [#allocation5], 32  }
 0x18c   :  { %1312 = vsyncadd [#allocation5], 4294967264 }
 0x18d   :  { %973 = vsyncpa [#allocation3], 1 }
 0x18e   :  { %974 = vsyncpa [#allocation5], 1 }

</bundles_post_ra>
